<compile_context>
chip_gen: v6e
topology: v6e:2x2x1
jax: 0.10.0
libtpu: 0.0.40
codegen_flags: <defaults>
</compile_context>

<pallas_src>
import math

import jax
import jax.numpy as jnp
from jax.experimental import pallas as pl
from jax.experimental.pallas import tpu as pltpu


def _compute_power_kernel(re_ref, im_ref, o_ref):
    # re_ref / im_ref / o_ref blocks: (bt, rt, lt).  Pure VPU elementwise work;
    # the kernel is HBM-bandwidth bound.  Output dtype matches the input dtype
    # (same as the PyTorch module, which squares/adds in the input dtype).
    re = re_ref[...]
    im = im_ref[...]
    o_ref[...] = re * re + im * im


def _sublane_min(dtype):
    """Minimum sublane tile for this dtype: 8 (f32), 16 (bf16), 32 (int8/fp8)."""
    bits = jnp.dtype(dtype).itemsize * 8
    return max(8, 256 // bits)


def _dense_factor(N, sublane_min):
    """Factor N = R2 * L2 with L2 a multiple of 128 (lane-dense).

    Prefers the largest L2 that still leaves R2 a multiple of the dtype's sublane
    minimum (sublane-dense vregs / VMEM tiles); falls back to R2 >= sublane_min,
    then to the smallest L2 (maximizing R2).  Returns None if N % 128 != 0.
    """
    if N % 128 != 0:
        return None
    cands = [l for l in (4096, 2048, 1024, 512, 256, 128) if N % l == 0]
    for l2 in cands:                       # best: sublane-dense R2
        if (N // l2) % sublane_min == 0:
            return N // l2, l2
    for l2 in cands:                       # next: at least one full sublane tile
        if (N // l2) >= sublane_min:
            return N // l2, l2
    l2 = cands[-1]                         # N small: maximize R2, minimize padding
    return N // l2, l2


def _choose_tiles(B, R, L, itemsize, sublane_min, step_budget_bytes=3 * 1024 * 1024):
    """Pick (bt, rt, lt) so one *padded* input-half block stays under step_budget_bytes.

    Padding-aware: every (rt, lt) slab occupies ceil(rt/sublane_min)*sublane_min x
    ceil(lt/128)*128 elements in VMEM.  One grid step holds 3 such blocks
    (real, imag, out); double-buffering doubles that, so steady-state VMEM is about
    6 * step_budget_bytes (~18 MiB), inside the explicit 32 MiB vmem limit on
    v5e / v6e / v7x (v7x physical VMEM is only 64 MiB, so we stay well below it).
    """
    pad = lambda n, m: -(-n // m) * m
    lane_pad = pad(L, 128)

    # 1) Keep (R, L) whole and fuse as many batch rows as fit (amortizes the
    #    ~0.35 us per-grid-step overhead for small per-row slabs).
    slab = pad(R, sublane_min) * lane_pad * itemsize
    if slab <= step_budget_bytes:
        bt = int(max(1, min(B, step_budget_bytes // slab)))
        # v7x dual-TC: give the leading "parallel" axis >= 2 steps when the split
        # still leaves big (>= 512 KiB) blocks; costs nothing on single-TC chips.
        if bt >= B and B >= 2:
            half = (B + 1) // 2
            if half * slab >= 512 * 1024:
                bt = int(half)
        return bt, int(R), int(L)

    # 2) One batch row is already large: tile R (sublane axis) in multiples of the
    #    dtype sublane minimum, keeping L whole so each DMA is one long contiguous run.
    row = sublane_min * lane_pad * itemsize
    rt = int(min(R, max(sublane_min, (step_budget_bytes // row) * sublane_min)))
    if pad(rt, sublane_min) * lane_pad * itemsize <= step_budget_bytes:
        return 1, rt, int(L)

    # 3) Still too large: also tile L (lane axis) in multiples of 128, kept >= 512
    #    where possible so strided-DMA rows stay >= 2 KiB.
    rt = int(min(R, sublane_min))
    per_lane_blk = pad(rt, sublane_min) * 128 * itemsize
    lt = int(min(L, max(128, (step_budget_bytes // per_lane_blk) * 128)))
    if L >= 512:
        lt = max(lt, 512)
    return 1, rt, int(lt)


def compute_power(x, in_shape):
    """Pallas implementation of ComputePower.forward.

    x: (B, in_shape, *trailing)  ->  (B, in_shape // 2, *trailing)
    """
    assert x.ndim >= 2 and x.shape[1] == in_shape, (x.shape, in_shape)
    assert in_shape % 2 == 0, "in_shape must be even (real/imag halves)"
    len_real = in_shape // 2
    B = x.shape[0]
    trailing = x.shape[2:]
    L_tr = int(math.prod(trailing)) if trailing else 1
    N = len_real * L_tr                      # elements per half, per batch row

    dtype = x.dtype
    itemsize = jnp.dtype(dtype).itemsize
    smin = _sublane_min(dtype)

    # Re-factor each half into a lane/sublane-dense 2-D slab (free HBM reshape:
    # the real half is the first N contiguous elements of each batch row, the imag
    # half the next N, and the op is purely elementwise).
    fact = _dense_factor(N, smin)
    if fact is not None:
        R2, L2 = fact
    else:
        # Rare fallback (N not a multiple of 128): natural layout, full-dim blocks.
        R2, L2 = (len_real, L_tr) if trailing else (1, len_real)
    x4 = x.reshape(B, 2, R2, L2)

    bt, rt, lt = _choose_tiles(B, R2, L2, itemsize, smin)
    grid = (pl.cdiv(B, bt), pl.cdiv(R2, rt), pl.cdiv(L2, lt))

    cost = pl.CostEstimate(
        flops=3 * B * N,                       # 2 squares + 1 add per output element
        transcendentals=0,
        bytes_accessed=3 * B * N * itemsize,   # read both halves, write one
    )

    # Two input specs over the same array: one per half, channel axis squeezed out.
    half_block = (bt, pl.Squeezed(), rt, lt)
    out = pl.pallas_call(
        _compute_power_kernel,
        out_shape=jax.ShapeDtypeStruct((B, R2, L2), dtype),
        grid=grid,
        in_specs=[
            pl.BlockSpec(half_block, lambda b, r, l: (b, 0, r, l)),   # real half
            pl.BlockSpec(half_block, lambda b, r, l: (b, 1, r, l)),   # imag half
        ],
        out_specs=pl.BlockSpec((bt, rt, lt), lambda b, r, l: (b, r, l)),
        compiler_params=pltpu.CompilerParams(
            # Elementwise -> every axis independent (megacore / dual-TC friendly).
            dimension_semantics=("parallel", "parallel", "parallel"),
            vmem_limit_bytes=32 * 1024 * 1024,
        ),
        cost_estimate=cost,
    )(x4, x4)

    out_shape = (B, len_real) + trailing if trailing else (B, len_real)
    return out.reshape(out_shape)


def compute_power_ref(x, in_shape):
    """Pure-JAX reference matching the PyTorch module."""
    len_real = in_shape // 2
    real = x[:, :len_real]
    imag = x[:, len_real:]
    return real ** 2 + imag ** 2


if __name__ == "__main__":
    key = jax.random.PRNGKey(0)
    k3d, k2d, kodd = jax.random.split(key, 3)

    # 4-D input: (B, in_shape, H, W) -- channel dim holds [real ; imag].
    B, in_shape, H, W = 2, 8, 16, 16
    x = jax.random.normal(k3d, (B, in_shape, H, W), dtype=jnp.float32)
    out = jax.block_until_ready(compute_power(x, in_shape))
    ref = compute_power_ref(x, in_shape)
    assert out.shape == (B, in_shape // 2, H, W), out.shape
    assert jnp.allclose(out, ref, atol=1e-6, rtol=1e-6), "4-D mismatch vs reference"

    # 2-D input: (B, in_shape) state-vector case (dense lane-major re-layout path).
    B2, in_shape2 = 4, 256
    x2 = jax.random.normal(k2d, (B2, in_shape2), dtype=jnp.float32)
    out2 = jax.block_until_ready(compute_power(x2, in_shape2))
    ref2 = compute_power_ref(x2, in_shape2)
    assert out2.shape == (B2, in_shape2 // 2), out2.shape
    assert jnp.allclose(out2, ref2, atol=1e-6, rtol=1e-6), "2-D mismatch vs reference"

    # Odd small shape: exercises the non-128-divisible fallback layout.
    B3, in_shape3 = 3, 10
    x3 = jax.random.normal(kodd, (B3, in_shape3), dtype=jnp.float32)
    out3 = jax.block_until_ready(compute_power(x3, in_shape3))
    ref3 = compute_power_ref(x3, in_shape3)
    assert out3.shape == (B3, in_shape3 // 2), out3.shape
    assert jnp.allclose(out3, ref3, atol=1e-6, rtol=1e-6), "odd-shape mismatch vs reference"

    print("KERNEL_OK")
</pallas_src>

<mosaic_0001>
module attributes {stable_mosaic.version = 11 : i64} {
  func.func @_compute_power_kernel(%arg0: i32, %arg1: i32, %arg2: i32, %arg3: memref<2x1x8x128xf32, #tpu.memory_space<vmem>>, %arg4: memref<2x1x8x128xf32, #tpu.memory_space<vmem>>, %arg5: memref<2x8x128xf32, #tpu.memory_space<vmem>>) attributes {dimension_semantics = [#tpu.dimension_semantics<parallel>, #tpu.dimension_semantics<parallel>, #tpu.dimension_semantics<parallel>], iteration_bounds = array<i64: 1, 1, 1>, scalar_prefetch = 0 : i64, scratch_operands = 0 : i64, tpu.core_type = #tpu.core_type<tc>, window_params = [{transform_indices = @transform_0, window_bounds = array<i64: 2, 1, 8, 128>}, {transform_indices = @transform_1, window_bounds = array<i64: 2, 1, 8, 128>}, {transform_indices = @transform_2, window_bounds = array<i64: 2, 8, 128>}]} {
    %c0 = arith.constant 0 : index
    %c0_0 = arith.constant 0 : index
    %c0_1 = arith.constant 0 : index
    %c0_2 = arith.constant 0 : index
    %0 = vector.load %arg3[%c0, %c0_0, %c0_1, %c0_2] : memref<2x1x8x128xf32, #tpu.memory_space<vmem>>, vector<2x1x8x128xf32>
    %1 = vector.shape_cast %0 : vector<2x1x8x128xf32> to vector<2x8x128xf32>
    %c0_3 = arith.constant 0 : index
    %c0_4 = arith.constant 0 : index
    %c0_5 = arith.constant 0 : index
    %c0_6 = arith.constant 0 : index
    %2 = vector.load %arg4[%c0_3, %c0_4, %c0_5, %c0_6] : memref<2x1x8x128xf32, #tpu.memory_space<vmem>>, vector<2x1x8x128xf32>
    %3 = vector.shape_cast %2 : vector<2x1x8x128xf32> to vector<2x8x128xf32>
    %4 = arith.mulf %1, %1 : vector<2x8x128xf32>
    %5 = arith.mulf %3, %3 : vector<2x8x128xf32>
    %6 = arith.addf %4, %5 : vector<2x8x128xf32>
    %c0_7 = arith.constant 0 : index
    %c0_8 = arith.constant 0 : index
    %c0_9 = arith.constant 0 : index
    %7 = vector.load %arg5[%c0_7, %c0_8, %c0_9] : memref<2x8x128xf32, #tpu.memory_space<vmem>>, vector<2x8x128xf32>
    tpu.vector_store %arg5[%c0_7, %c0_8, %c0_9], %6 {strides = array<i32>} : memref<2x8x128xf32, #tpu.memory_space<vmem>>, vector<2x8x128xf32>,
    return
  }
  func.func @transform_0(%arg0: i32, %arg1: i32, %arg2: i32) -> (i32, i32, i32, i32) {
    %c0_i32 = arith.constant 0 : i32
    %c0_i32_0 = arith.constant 0 : i32
    return %arg0, %c0_i32, %arg1, %arg2 : i32, i32, i32, i32
  }
  func.func @transform_1(%arg0: i32, %arg1: i32, %arg2: i32) -> (i32, i32, i32, i32) {
    %c1_i32 = arith.constant 1 : i32
    %c0_i32 = arith.constant 0 : i32
    return %arg0, %c1_i32, %arg1, %arg2 : i32, i32, i32, i32
  }
  func.func @transform_2(%arg0: i32, %arg1: i32, %arg2: i32) -> (i32, i32, i32) {
    %c0_i32 = arith.constant 0 : i32
    return %arg0, %arg1, %arg2 : i32, i32, i32
  }
}

</mosaic_0001>

<bundles_post_ra>
// kernel: tpu_custom_call.1
= control target key start
LH: loop header
LB: loop body
LE: loop exit
PB: predicated region body
PF: predicated region fallthrough
CT: control target
= control target key end

     0   :  { %7 = vsyncpa [#allocation3], 0  ;;  %s183_s0 = inlined_call_operand.hbm [shape: f32[2,2,8,128], index: 0, kind: input, shape index: {}]   ;;  %s184_s1 = inlined_call_operand.hbm [shape: f32[2,2,8,128], index: 1, kind: input, shape index: {}]   ;;  %s185_s2 = inlined_call_operand.hbm [shape: f32[2,8,128], index: 2, kind: output, shape index: {}]  }
   0x1   :  { %8 = vsyncpa [#allocation6], 0 }
   0x2   :  { %9 = vsyncpa [#allocation4], 0  ;;  %s146_s9 = smov [#allocation2]  }
   0x3   :  { %s15_s10 = sshll.u32 %s146_s9, 4  ;;  %s16_s10 = int_to_ptr.vmem [resolvable:$true] %s15_s10 }
   0x4   :  { %s85_s11 = scalar_lea.vmem %s16_s10, 256  ;;  %p90_p1 = scmp.lt.s32.totalorder %s16_s10, %s16_s10 }
   0x5   :  { %p86_p0 = scmp.ne.s32.totalorder %s16_s10, %s85_s11  ;;  %p91_p2 = scmp.lt.s32.totalorder %s85_s11, %s85_s11 }
   0x7   :  { %p92_p3 = por %p91_p2, %p90_p1 }
   0x9   :  { %p93_p4 = pnand %p92_p3, %p86_p0 }
   0xb   :  { %96 = shalt.err (!%p93_p4)
}
   0xc   :  { %s147_s12 = smov 256   ;;  %s148_s13 = smov 128  }
   0xd   :  { %s149_s14 = smov 8   ;;  %s27_s19 = scalar_lea.hbm %s184_s1, 128 }
   0xe   :  { %21 = dma.hbm_to_vmem [thread:$0]  %s183_s0, 256, %s16_s10, [#allocation3], %s147_s12, %s148_s13, %s149_s14  }
   0xf   :  { %s150_s20 = smov [#allocation5]  }
  0x10   :  { %s28_s21 = sshll.u32 %s150_s20, 4  ;;  %s29_s21 = int_to_ptr.vmem [resolvable:$true] %s28_s21 }
  0x11   :  { %s107_s22 = scalar_lea.vmem %s29_s21, 256  ;;  %p112_p6 = scmp.lt.s32.totalorder %s29_s21, %s29_s21 }
  0x12   :  { %p108_p5 = scmp.ne.s32.totalorder %s29_s21, %s107_s22  ;;  %p113_p7 = scmp.lt.s32.totalorder %s107_s22, %s107_s22 }
  0x14   :  { %p114_p8 = por %p113_p7, %p112_p6 }
  0x16   :  { %p115_p9 = pnand %p114_p8, %p108_p5 }
  0x18   :  { %118 = shalt.err (!%p115_p9)
}
  0x19   :  { %34 = dma.hbm_to_vmem [thread:$0]  %s27_s19, 256, %s29_s21, [#allocation6], %s147_s12, %s148_s13, %s149_s14  }
  0x1a   :  { %140 = dma.done.wait [#allocation3], 256  }
  0x1b   :  { %141 = vsyncadd [#allocation3], 4294967040 }
  0x1c   :  { %142 = dma.done.wait [#allocation6], 256  }
  0x1d   :  { %143 = vsyncadd [#allocation6], 4294967040  ;;  %v41_v0 = vld [vmem:[#allocation2] sm:$0xff]  ;;  %v43_v1 = vld [vmem:[#allocation5] sm:$0xff]  ;;  %s151_s0 = smov [#allocation7]  }
  0x1e   :  { %v42_v2 = vld [vmem:[#allocation2 + $0x8] sm:$0xff]  ;;  %v45_v3 = vmul.f32 %v41_v0, %v41_v0  ;;  %v47_v4 = vmul.f32 %v43_v1, %v43_v1  ;;  %v44_v5 = vld [vmem:[#allocation5 + $0x8] sm:$0xff]  ;;  %s58_s1 = sshll.u32 %s151_s0, 4  ;;  %s59_s1 = int_to_ptr.vmem [resolvable:$true] %s58_s1 }
  0x1f   :  { %v46_v6 = vmul.f32 %v42_v2, %v42_v2  ;;  %v48_v7 = vmul.f32 %v44_v5, %v44_v5  ;;  %s120_s23 = scalar_lea.vmem %s59_s1, 256  ;;  %p125_p11 = scmp.lt.s32.totalorder %s59_s1, %s59_s1 }
  0x20   :  { %v49_v8 = vadd.f32 %v47_v4, %v45_v3  ;;  %p121_p10 = scmp.ne.s32.totalorder %s59_s1, %s120_s23  ;;  %p126_p12 = scmp.lt.s32.totalorder %s120_s23, %s120_s23 }
  0x21   :  { %v50_v9 = vadd.f32 %v48_v7, %v46_v6 }
  0x22   :  { %51 = vst [vmem:[#allocation7] sm:$0xff] %v49_v8  ;;  %p127_p13 = por %p126_p12, %p125_p11 }
  0x23   :  { %52 = vst [vmem:[#allocation7 + $0x8] sm:$0xff] %v50_v9 }
  0x24   :  { %p128_p0 = pnand %p127_p13, %p121_p10 }
  0x26   :  { %131 = shalt.err (!%p128_p0)
}
  0x27   :  { %64 = dma.vmem_to_hbm [thread:$0]  %s59_s1, 256, %s185_s2, [#allocation4], %s148_s13, %s148_s13, %s149_s14  }
  0x28   :  { %144 = dma.done.wait [#allocation4], 256  }
  0x29   :  { %145 = vsyncadd [#allocation4], 4294967040 }
  0x2a   :  { %68 = vsyncpa [#allocation3], 1 }
  0x2b   :  { %69 = vsyncpa [#allocation6], 1 }
  0x2c   :  { %70 = vsyncpa [#allocation4], 1 }

</bundles_post_ra>
